<compile_context>
chip_gen: v5e
topology: v5e:2x2
jax: 0.10.0
libtpu: 0.0.40
codegen_flags: <defaults>
</compile_context>

<pallas_src>
import functools

import jax
import jax.numpy as jnp
from jax import lax
from jax.experimental import pallas as pl
from jax.experimental.pallas import tpu as pltpu

LANES = 128  # padded width of the fused head matmul / output slab


# ----------------------------------------------------------------------------
# Pallas kernel: Linear -> ReLU -> fused (dispatch + error-type) heads
# ----------------------------------------------------------------------------
def dual_head_router_kernel(x_ref,      # [TB, D]      input features
                            w1_ref,     # [D,  H]      hidden_layer.weight^T
                            b1_ref,     # [1,  H]      hidden_layer.bias
                            wh_ref,     # [H,  LANES]  packed [wd | we | 0...]
                            bh_ref,     # [1,  LANES]  packed [bd | be | 0...]
                            out_ref,    # [TB, LANES]  out: [g | p | 0...]
                            *, num_experts, num_error_types):
    x = x_ref[...]

    # h = relu(x @ W1 + b1)
    h = jnp.dot(x, w1_ref[...], preferred_element_type=jnp.float32) + b1_ref[...]
    h = jnp.maximum(h, 0.0)

    # One lane-dense matmul for both heads: [TB, LANES]
    heads = jnp.dot(h, wh_ref[...], preferred_element_type=jnp.float32) + bh_ref[...]

    # Lane masks: g lives in [0, E), p lives in [E, E+T), rest is padding.
    lane = lax.broadcasted_iota(jnp.int32, heads.shape, 1)
    g_mask = lane < num_experts
    p_mask = (lane >= num_experts) & (lane < num_experts + num_error_types)

    # Masked, numerically-stable softmax over the dispatch lanes only.
    gl = jnp.where(g_mask, heads, -jnp.inf)
    m = jnp.max(gl, axis=-1, keepdims=True)
    eg = jnp.where(g_mask, jnp.exp(gl - m), 0.0)
    denom = jnp.sum(eg, axis=-1, keepdims=True)
    g = eg * pl.reciprocal(denom, approx=True)          # EUP slot, ~free

    # Lane-dense store: g and p occupy disjoint lanes, padding stays 0.
    out_ref[...] = g + jnp.where(p_mask, heads, 0.0)


# ----------------------------------------------------------------------------
# Wrapper: host-side weight packing, batch tiling, output slicing
# ----------------------------------------------------------------------------
def dual_head_router_forward(x, params, *, block_b=256):
    """x: [B, D] float32. Returns (g [B, E], p [B, T])."""
    w1, b1 = params["w1"], params["b1"]          # [D, H], [1, H]
    wd, bd = params["wd"], params["bd"]          # [H, E], [E]
    we, be = params["we"], params["be"]          # [H, T], [T]

    D, H = w1.shape
    E = wd.shape[1]
    T = we.shape[1]
    assert E + T <= LANES, "fused head width must fit in one 128-lane slab"

    # Pack the two tiny heads into one lane-dense [H, 128] matrix (+ bias).
    wh = jnp.zeros((H, LANES), jnp.float32)
    wh = wh.at[:, :E].set(wd).at[:, E:E + T].set(we)
    bh = jnp.zeros((1, LANES), jnp.float32)
    bh = bh.at[:, :E].set(bd.reshape(1, E)).at[:, E:E + T].set(be.reshape(1, T))

    # Batch tiling: TB multiple of 8 (f32 sublane); pad B up to a multiple.
    B = x.shape[0]
    b_pad8 = ((B + 7) // 8) * 8
    TB = max(8, min(block_b, b_pad8))
    TB = ((TB + 7) // 8) * 8
    Bp = ((B + TB - 1) // TB) * TB
    if Bp != B:
        x = jnp.pad(x, ((0, Bp - B), (0, 0)))

    grid = (Bp // TB,)

    cost = pl.CostEstimate(
        flops=2 * Bp * D * H + 2 * Bp * H * LANES,
        transcendentals=Bp * E,
        bytes_accessed=4 * (Bp * D + D * H + H + H * LANES + LANES + Bp * LANES),
    )

    kernel = functools.partial(
        dual_head_router_kernel, num_experts=E, num_error_types=T)

    out = pl.pallas_call(
        kernel,
        out_shape=jax.ShapeDtypeStruct((Bp, LANES), jnp.float32),
        grid=grid,
        in_specs=[
            pl.BlockSpec((TB, D), lambda i: (i, 0)),       # x: tiled over batch
            pl.BlockSpec((D, H), lambda i: (0, 0)),        # W1: resident
            pl.BlockSpec((1, H), lambda i: (0, 0)),        # b1: resident
            pl.BlockSpec((H, LANES), lambda i: (0, 0)),    # packed heads W
            pl.BlockSpec((1, LANES), lambda i: (0, 0)),    # packed heads b
        ],
        out_specs=pl.BlockSpec((TB, LANES), lambda i: (i, 0)),
        compiler_params=pltpu.CompilerParams(
            dimension_semantics=("parallel",)),
        cost_estimate=cost,
    )(x, w1, b1, wh, bh)

    g = out[:B, :E]
    p = out[:B, E:E + T]
    return g, p


# ----------------------------------------------------------------------------
# Pure-JAX reference
# ----------------------------------------------------------------------------
def dual_head_router_reference(x, params):
    h = jnp.maximum(x @ params["w1"] + params["b1"], 0.0)
    g = jax.nn.softmax(h @ params["wd"] + params["bd"], axis=-1)
    p = h @ params["we"] + params["be"]
    return g, p


if __name__ == "__main__":
    # Small, module-consistent shapes (input_dim=768, hidden_dim=128).
    B = 16            # batch
    D, H = 768, 128   # input_dim, hidden_dim
    E = 4             # num_experts
    T = 6             # num_error_types

    key = jax.random.PRNGKey(0)
    keys = jax.random.split(key, 8)
    scale = 0.02

    params = {
        "w1": scale * jax.random.normal(keys[0], (D, H), jnp.float32),
        "b1": scale * jax.random.normal(keys[1], (1, H), jnp.float32),
        "wd": scale * jax.random.normal(keys[2], (H, E), jnp.float32),
        "bd": scale * jax.random.normal(keys[3], (E,), jnp.float32),
        "we": scale * jax.random.normal(keys[4], (H, T), jnp.float32),
        "be": scale * jax.random.normal(keys[5], (T,), jnp.float32),
    }
    x = jax.random.normal(keys[6], (B, D), jnp.float32)

    # Pallas forward (block_b=8 so the test actually exercises a multi-step grid).
    g, p = dual_head_router_forward(x, params, block_b=8)
    jax.block_until_ready((g, p))

    # Sanity check against pure-JAX reference.
    ref_g, ref_p = dual_head_router_reference(x, params)
    # g uses the approximate (EUP) reciprocal -> slightly looser tolerance.
    assert jnp.allclose(g, ref_g, atol=2e-3, rtol=2e-3), "dispatch softmax mismatch"
    assert jnp.allclose(p, ref_p, atol=1e-4, rtol=1e-4), "error-type logits mismatch"
    assert g.shape == (B, E) and p.shape == (B, T)

    print("KERNEL_OK")
</pallas_src>

<mosaic_0001>
module attributes {stable_mosaic.version = 11 : i64} {
  func.func @dual_head_router_kernel(%arg0: i32, %arg1: memref<8x768xf32, #tpu.memory_space<vmem>>, %arg2: memref<768x128xf32, #tpu.memory_space<vmem>>, %arg3: memref<1x128xf32, #tpu.memory_space<vmem>>, %arg4: memref<128x128xf32, #tpu.memory_space<vmem>>, %arg5: memref<1x128xf32, #tpu.memory_space<vmem>>, %arg6: memref<8x128xf32, #tpu.memory_space<vmem>>) attributes {dimension_semantics = [#tpu.dimension_semantics<parallel>], iteration_bounds = array<i64: 2>, scalar_prefetch = 0 : i64, scratch_operands = 0 : i64, tpu.core_type = #tpu.core_type<tc>, window_params = [{transform_indices = @transform_0, window_bounds = array<i64: 8, 768>}, {pipeline_mode = #tpu.pipeline_mode<synchronous>, transform_indices = @transform_1, window_bounds = array<i64: 768, 128>}, {pipeline_mode = #tpu.pipeline_mode<synchronous>, transform_indices = @transform_2, window_bounds = array<i64: 1, 128>}, {pipeline_mode = #tpu.pipeline_mode<synchronous>, transform_indices = @transform_3, window_bounds = array<i64: 128, 128>}, {pipeline_mode = #tpu.pipeline_mode<synchronous>, transform_indices = @transform_4, window_bounds = array<i64: 1, 128>}, {transform_indices = @transform_5, window_bounds = array<i64: 8, 128>}]} {
    %c0 = arith.constant 0 : index
    %c0_0 = arith.constant 0 : index
    %0 = vector.load %arg1[%c0, %c0_0] : memref<8x768xf32, #tpu.memory_space<vmem>>, vector<8x768xf32>
    %c0_1 = arith.constant 0 : index
    %c0_2 = arith.constant 0 : index
    %1 = vector.load %arg2[%c0_1, %c0_2] : memref<768x128xf32, #tpu.memory_space<vmem>>, vector<768x128xf32>
    %cst = arith.constant dense<0.000000e+00> : vector<8x128xf32>
    %2 = tpu.matmul %0, %1, %cst {dimension_numbers = #tpu.dot_dimension_numbers<[1], [0], [0], [1], [0, 0, 1, 1], [], []>} : vector<8x768xf32>, vector<768x128xf32>, vector<8x128xf32> -> vector<8x128xf32>
    %c0_3 = arith.constant 0 : index
    %c0_4 = arith.constant 0 : index
    %3 = vector.load %arg3[%c0_3, %c0_4] : memref<1x128xf32, #tpu.memory_space<vmem>>, vector<1x128xf32>
    %4 = vector.broadcast %3 : vector<1x128xf32> to vector<8x128xf32>
    %5 = arith.addf %2, %4 : vector<8x128xf32>
    %cst_5 = arith.constant 0.000000e+00 : f32
    %6 = vector.broadcast %cst_5 : f32 to vector<8x128xf32>
    %7 = arith.maximumf %5, %6 : vector<8x128xf32>
    %c0_6 = arith.constant 0 : index
    %c0_7 = arith.constant 0 : index
    %8 = vector.load %arg4[%c0_6, %c0_7] : memref<128x128xf32, #tpu.memory_space<vmem>>, vector<128x128xf32>
    %cst_8 = arith.constant dense<0.000000e+00> : vector<8x128xf32>
    %9 = tpu.matmul %7, %8, %cst_8 {dimension_numbers = #tpu.dot_dimension_numbers<[1], [0], [0], [1], [0, 0, 1, 1], [], []>} : vector<8x128xf32>, vector<128x128xf32>, vector<8x128xf32> -> vector<8x128xf32>
    %c0_9 = arith.constant 0 : index
    %c0_10 = arith.constant 0 : index
    %10 = vector.load %arg5[%c0_9, %c0_10] : memref<1x128xf32, #tpu.memory_space<vmem>>, vector<1x128xf32>
    %11 = vector.broadcast %10 : vector<1x128xf32> to vector<8x128xf32>
    %12 = arith.addf %9, %11 : vector<8x128xf32>
    %13 = tpu.iota {dimensions = array<i32: 1>} : vector<8x128xi32>
    %c4_i32 = arith.constant 4 : i32
    %14 = vector.broadcast %c4_i32 : i32 to vector<8x128xi32>
    %15 = arith.cmpi slt, %13, %14 : vector<8x128xi32>
    %c4_i32_11 = arith.constant 4 : i32
    %16 = vector.broadcast %c4_i32_11 : i32 to vector<8x128xi32>
    %17 = arith.cmpi sge, %13, %16 : vector<8x128xi32>
    %c10_i32 = arith.constant 10 : i32
    %18 = vector.broadcast %c10_i32 : i32 to vector<8x128xi32>
    %19 = arith.cmpi slt, %13, %18 : vector<8x128xi32>
    %20 = arith.andi %17, %19 : vector<8x128xi1>
    %cst_12 = arith.constant 0xFF800000 : f32
    %21 = vector.broadcast %cst_12 : f32 to vector<8x128xf32>
    %22 = arith.select %15, %12, %21 : vector<8x128xi1>, vector<8x128xf32>
    %cst_13 = arith.constant dense<0xFF800000> : vector<8xf32>
    %23 = vector.multi_reduction <maximumf>, %22, %cst_13 [1] : vector<8x128xf32> to vector<8xf32>
    %24 = vector.shape_cast %23 : vector<8xf32> to vector<8x1xf32>
    %25 = vector.broadcast %24 : vector<8x1xf32> to vector<8x128xf32>
    %26 = arith.subf %22, %25 : vector<8x128xf32>
    %27 = math.exp %26 : vector<8x128xf32>
    %cst_14 = arith.constant 0.000000e+00 : f32
    %28 = vector.broadcast %cst_14 : f32 to vector<8x128xf32>
    %29 = arith.select %15, %27, %28 : vector<8x128xi1>, vector<8x128xf32>
    %cst_15 = arith.constant dense<0.000000e+00> : vector<8xf32>
    %30 = vector.multi_reduction <add>, %29, %cst_15 [1] : vector<8x128xf32> to vector<8xf32>
    %31 = vector.shape_cast %30 : vector<8xf32> to vector<8x1xf32>
    %32 = tpu.reciprocal %31 {approx = true} : vector<8x1xf32> -> vector<8x1xf32>
    %33 = vector.broadcast %32 : vector<8x1xf32> to vector<8x128xf32>
    %34 = arith.mulf %29, %33 : vector<8x128xf32>
    %cst_16 = arith.constant 0.000000e+00 : f32
    %35 = vector.broadcast %cst_16 : f32 to vector<8x128xf32>
    %36 = arith.select %20, %12, %35 : vector<8x128xi1>, vector<8x128xf32>
    %37 = arith.addf %34, %36 : vector<8x128xf32>
    %c0_17 = arith.constant 0 : index
    %c0_18 = arith.constant 0 : index
    %38 = vector.load %arg6[%c0_17, %c0_18] : memref<8x128xf32, #tpu.memory_space<vmem>>, vector<8x128xf32>
    tpu.vector_store %arg6[%c0_17, %c0_18], %37 {strides = array<i32>} : memref<8x128xf32, #tpu.memory_space<vmem>>, vector<8x128xf32>,
    return
  }
  func.func @transform_0(%arg0: i32) -> (i32, i32) {
    %c0_i32 = arith.constant 0 : i32
    %c0_i32_0 = arith.constant 0 : i32
    return %arg0, %c0_i32 : i32, i32
  }
  func.func @transform_1(%arg0: i32) -> (i32, i32) {
    %c0_i32 = arith.constant 0 : i32
    %c0_i32_0 = arith.constant 0 : i32
    %c0_i32_1 = arith.constant 0 : i32
    return %c0_i32, %c0_i32_0 : i32, i32
  }
  func.func @transform_2(%arg0: i32) -> (i32, i32) {
    %c0_i32 = arith.constant 0 : i32
    %c0_i32_0 = arith.constant 0 : i32
    %c0_i32_1 = arith.constant 0 : i32
    return %c0_i32, %c0_i32_0 : i32, i32
  }
  func.func @transform_3(%arg0: i32) -> (i32, i32) {
    %c0_i32 = arith.constant 0 : i32
    %c0_i32_0 = arith.constant 0 : i32
    %c0_i32_1 = arith.constant 0 : i32
    return %c0_i32, %c0_i32_0 : i32, i32
  }
  func.func @transform_4(%arg0: i32) -> (i32, i32) {
    %c0_i32 = arith.constant 0 : i32
    %c0_i32_0 = arith.constant 0 : i32
    %c0_i32_1 = arith.constant 0 : i32
    return %c0_i32, %c0_i32_0 : i32, i32
  }
  func.func @transform_5(%arg0: i32) -> (i32, i32) {
    %c0_i32 = arith.constant 0 : i32
    %c0_i32_0 = arith.constant 0 : i32
    return %arg0, %c0_i32 : i32, i32
  }
}

</mosaic_0001>

<bundles_post_ra>
// kernel: tpu_custom_call.1
= control target key start
LH: loop header
LB: loop body
LE: loop exit
PB: predicated region body
PF: predicated region fallthrough
CT: control target
= control target key end

     0   :  { %s1116_s0 = inlined_call_operand.hbm [shape: f32[16,768], index: 0, kind: input, shape index: {}]   ;;  %s1117_s1 = inlined_call_operand.hbm [shape: f32[768,128], index: 1, kind: input, shape index: {}]   ;;  %s1118_s2 = inlined_call_operand.vmem [shape: f32[1,128], index: 2, kind: input, shape index: {}]   ;;  %s1119_s3 = inlined_call_operand.hbm [shape: f32[128,128], index: 3, kind: input, shape index: {}]   ;;  %s1120_s4 = inlined_call_operand.vmem [shape: f32[1,128], index: 4, kind: input, shape index: {}]   ;;  %s1121_s5 = inlined_call_operand.hbm [shape: f32[16,128], index: 5, kind: output, shape index: {}]  }
   0x1   :  { %1122 = sst [smem:[#allocation12_spill]] %s1117_s1 }
   0x2   :  { %10 = vsyncpa [#allocation3], 0 }
   0x3   :  { %12 = vsyncpa [#allocation3 + $0x1], 0 }
   0x4   :  { %13 = vsyncpa [#allocation6], 0 }
   0x5   :  { %14 = vsyncpa [#allocation4], 0 }
   0x6   :  { %16 = vsyncpa [#allocation4 + $0x1], 0  ;;  %s956_s18 = smov 0   ;;  %s958_s19 = smov 0  }
   0x7   :  { %s960_s20 = smov 0   ;;  %s962_s21 = smov 0  }
   0x8 LB: > { %s1123_s1 = sld [smem:[#allocation12_spill]]  ;;  %s980_s25 = sadd.s32 4294967295, %s920_s21   ;;  %s920_s21 = sphi %s962_s21, %s1135_s21   ;;  %s916_s20 = sphi %s960_s20, %s1134_s20   ;;  %s912_s19 = sphi %s958_s19, %s1133_s19   ;;  %s908_s18 = sphi %s956_s18, %s1132_s18  }
   0x9   : > { %p669_p0 = scmp.ge.s32.totalorder %s920_s21, 1  ;;  %p43_p1 = scmp.eq.s32.totalorder %s980_s25, 0 }
   0xa   : > { %p163_p2 = scmp.lt.s32.totalorder %s920_s21, 3  ;;  %s922_s27 = smov [#allocation5]  }
   0xb   : > { %s176_s28 = sshll.u32 %s922_s27, 4  ;;  %s191_s6 = sshll.u32 %s1119_s3, 4  ;;  %s177_s28 = int_to_ptr.vmem [resolvable:$true] %s176_s28  ;;  %s192_s6 = int_to_ptr.hbm [resolvable:$true] %s191_s6 }
   0xc   : > { %p985_p3 = pnand %p669_p0, %p163_p2  ;;  %s923_s7 = smov [#allocation7]  }
   0xd   : > { %s193_s8 = sshll.u32 %s923_s7, 4  ;;  %s924_s9 = smov 128   ;;  %s194_s8 = int_to_ptr.vmem [resolvable:$true] %s193_s8 }
   0xe   : > { %s174_s24 = sshll.u32 %s1123_s1, 4  ;;  %p697_p4 = pneg %p985_p3  ;;  %s175_s24 = int_to_ptr.hbm [resolvable:$true] %s174_s24 }
   0xf   : > { %s925_s10 = smov 8   ;;  %s668_s11 = sadd.s32 4294967294, %s920_s21  }
  0x10   : > { %p698_p6 = pnand %p697_p4, %p43_p1  ;;  %s999_s12 = sadd.s32 1, %s920_s21  }
  0x11   : > { %s26_s13 = ssub.s32 %s920_s21, %s999_s12  ;;  %s29_s14 = sadd.s32 1, %s916_s20 }
  0x12   : > { %700 = dma.hbm_to_vmem [thread:$0]  (!%p698_p6), %s175_s24, 12288, %s177_s28, [#allocation6], %s924_s9, %s924_s9, %s925_s10  }
  0x13   : > { %703 = dma.hbm_to_vmem [thread:$0]  (!%p698_p6), %s192_s6, 2048, %s194_s8, [#allocation6], %s924_s9, %s924_s9, %s925_s10  }
  0x14   : > { %p27_p7 = scmp.eq.s32.totalorder %s26_s13, 0  ;;  %p36_p8 = scmp.ne.s32.totalorder %s916_s20, %s912_s19 }
  0x15   : > { %p37_p9 = scmp.eq.s32.totalorder %s920_s21, 0  ;;  %p42_p10 = scmp.ne.s32.totalorder %s912_s19, %s908_s18 }
  0x16   : > { %s1010_s15 = scalar_select %p27_p7, %s916_s20, %s29_s14  }
  0x17   : > { %p38_p11 = por %p37_p9, %p36_p8  ;;  %p1014_p12 = por %p43_p1, %p42_p10 }
  0x18   : > { %p150_p13 = scmp.eq.s32.totalorder %s980_s25, 1  ;;  %p156_p0 = scmp.eq.s32.totalorder %s668_s11, 1 }
  0x19   : > { %p714_p2 = scmp.lt.s32.totalorder %s920_s21, 2  ;;  %s210_s17 = sand.u32 1, %s916_s20  }
  0x1a   : > { %p1021_p4 = por %p150_p13, %p36_p8  ;;  %p1025_p6 = por %p156_p0, %p42_p10 }
  0x1b   : > { %s682_s24 = smul.u32 48, %s210_s17  ;;  %p1030_p7 = pnand %p714_p2, %p38_p11 }
  0x1c   : > { %s683_s27 = smul.u32 48, %s920_s21  ;;  %s211_s10 = scalar_lea.sflag [#allocation3], %s210_s17 }
  0x1d   : > { %s214_s7 = scalar_lea.vmem [#allocation2], %s682_s24  ;;  %p824_p9 = pneg %p1030_p7 }
  0x1e   : > { %s219_s6 = scalar_lea.hbm %s1116_s0, %s683_s27  ;;  %s223_s8 = sshll.u32 %s214_s7, 4  ;;  %s224_s8 = int_to_ptr.vmem [resolvable:$true] %s223_s8 }
  0x1f   : > { %s221_s9 = sshll.u32 %s219_s6, 4  ;;  %s827_s29 = scalar_lea.hbm %s1116_s0, 96  ;;  %s222_s9 = int_to_ptr.hbm [resolvable:$true] %s221_s9 }
  0x20   : > { %s820_s11 = sshra.s32 %s222_s9, 4  ;;  %s821_s11 = int_to_ptr.hbm [resolvable:$true] %s820_s11 }
  0x21   : > { %s822_s13 = scalar_lea.hbm %s821_s11, 48  ;;  %p828_p13 = scmp.lt.s32.totalorder %s821_s11, %s1116_s0 }
  0x22   : > { %p823_p8 = scmp.ne.s32.totalorder %s821_s11, %s822_s13  ;;  %p829_p0 = scmp.lt.s32.totalorder %s827_s29, %s822_s13 }
  0x24   : > { %p825_p10 = pnand %p824_p9, %p823_p8  ;;  %p830_p2 = por %p829_p0, %p828_p13 }
  0x26   : > { %p826_p11 = pneg %p825_p10 }
  0x28   : > { %p831_p5 = pnand %p830_p2, %p826_p11 }
  0x2a   : > { %834 = shalt.err (!%p831_p5)
}
  0x2b   : > { %707 = dma.hbm_to_vmem [thread:$0]  (!%p1030_p7), %s222_s9, 768, %s224_s8, %s211_s10  }
  0x2c   : > { %232 = sbr.rel (%p985_p3) target bundleno = 641 (0x281), region = 40  ;;  %s1050_s17 = sand.u32 (!%p985_p3), 1, %s912_s19  }
  0x2d   : > { %s684_s1 = smul.u32 (!%p985_p3), 48, %s1050_s17  ;;  %s235_s24 = scalar_lea.sflag (!%p985_p3), [#allocation3], %s1050_s17 }
  0x2f   : > { %s1054_s6 = scalar_lea.vmem (!%p985_p3), [#allocation2], %s684_s1 }
  0x31   : > { %895 = dma.done.wait (%p1014_p12), %s235_s24, 768  }
  0x32   : > { %897 = vsyncadd (%p1014_p12), %s235_s24, 4294966528 }
  0x33   : > { %899 = dma.done.wait (%p43_p1), [#allocation6], 14336  }
  0x34   : > { %901 = vsyncadd (%p43_p1), [#allocation6], 4294952960  ;;  %v297_v0 = vld [vmem:[#allocation5 + $0x78] sm:$0xff]  ;;  %v296_v1 = vld [vmem:[#allocation5 + $0x70] sm:$0xff]  ;;  %s677_s8 = sshll.u32 %s1050_s17, 3  ;;  %s679_s9 = sshll.u32 %s980_s25, 3 }
  0x35   : > { %v313_v2 = vld [vmem:[#allocation5 + $0xf8] sm:$0xff]  ;;  %382 = vmatpush.msra.mxu0 %v297_v0  ;;  %v312_v3 = vld [vmem:[#allocation5 + $0xf0] sm:$0xff]  ;;  %v295_v4 = vld [vmem:[#allocation5 + $0x68] sm:$0xff]  ;;  %s574_s13 = scalar_lea.hbm %s1121_s5, %s679_s9  ;;  %s275_s14 = scalar_lea.vmem [#allocation8], %s677_s8 }
  0x36   : > { %402 = vmatpush.msra.mxu1 %v313_v2  ;;  %v311_v5 = vld [vmem:[#allocation5 + $0xe8] sm:$0xff]  ;;  %v294_v6 = vld [vmem:[#allocation5 + $0x60] sm:$0xff]  ;;  %v293_v8 = vld [vmem:[#allocation5 + $0x58] sm:$0xff]  ;;  %s576_s29 = sshll.u32 %s275_s14, 4  ;;  %s578_s30 = sshll.u32 %s574_s13, 4  ;;  %s577_s29 = int_to_ptr.vmem [resolvable:$true] %s576_s29  ;;  %s579_s30 = int_to_ptr.hbm [resolvable:$true] %s578_s30 }
  0x37   : > { %383 = vmatpush.msra.mxu0 %v296_v1  ;;  %v310_v7 = vld [vmem:[#allocation5 + $0xe0] sm:$0xff]  ;;  %v309_v9 = vld [vmem:[#allocation5 + $0xd8] sm:$0xff]  ;;  %v292_v10 = vld [vmem:[#allocation5 + $0x50] sm:$0xff]  ;;  %s564_s27 = scalar_lea.sflag [#allocation4], %s1050_s17  ;;  %s864_s1 = sshra.s32 %s579_s30, 4  ;;  %s865_s1 = int_to_ptr.hbm [resolvable:$true] %s864_s1 }
  0x38   : > { %403 = vmatpush.msra.mxu1 %v312_v3  ;;  %v329_v11 = vld [vmem:[#allocation5 + $0x178] sm:$0xff]  ;;  %v308_v12 = vld [vmem:[#allocation5 + $0xd0] sm:$0xff]  ;;  %v327_v15 = vld [vmem:[#allocation5 + $0x168] sm:$0xff]  ;;  %s866_s24 = scalar_lea.hbm %s865_s1, 8  ;;  %s870_s26 = scalar_lea.hbm %s1121_s5, 16 }
  0x39   : > { %384 = vmatpush.msra.mxu0 %v295_v4  ;;  %422 = vmatpush.msra.mxu2 %v329_v11  ;;  %v328_v13 = vld [vmem:[#allocation5 + $0x170] sm:$0xff]  ;;  %v345_v14 = vld [vmem:[#allocation5 + $0x1f8] sm:$0xff]  ;;  %v291_v17 = vld [vmem:[#allocation5 + $0x48] sm:$0xff]  ;;  %p867_p1 = scmp.ne.s32.totalorder %s865_s1, %s866_s24  ;;  %p871_p12 = scmp.lt.s32.totalorder %s865_s1, %s1121_s5 }
  0x3a   : > { %404 = vmatpush.msra.mxu1 %v311_v5  ;;  %v344_v16 = vld [vmem:[#allocation5 + $0x1f0] sm:$0xff]  ;;  %v307_v18 = vld [vmem:[#allocation5 + $0xc8] sm:$0xff]  ;;  %442 = vmatpush.msra.mxu3 %v345_v14  ;;  %v326_v19 = vld [vmem:[#allocation5 + $0x160] sm:$0xff]  ;;  %p872_p7 = scmp.lt.s32.totalorder %s870_s26, %s866_s24 }
  0x3b   : > { %385 = vmatpush.msra.mxu0 %v294_v6  ;;  %423 = vmatpush.msra.mxu2 %v328_v13  ;;  %v343_v20 = vld [vmem:[#allocation5 + $0x1e8] sm:$0xff]  ;;  %v290_v21 = vld [vmem:[#allocation5 + $0x40] sm:$0xff]  ;;  %v325_v23 = vld [vmem:[#allocation5 + $0x158] sm:$0xff]  ;;  %p868_p3 = pnand %p867_p1, %p1021_p4 }
  0x3c   : > { %405 = vmatpush.msra.mxu1 %v310_v7  ;;  %v306_v22 = vld [vmem:[#allocation5 + $0xc0] sm:$0xff]  ;;  %443 = vmatpush.msra.mxu3 %v344_v16  ;;  %v289_v25 = vld [vmem:[#allocation5 + $0x38] sm:$0xff]  ;;  %v324_v27 = vld [vmem:[#allocation5 + $0x150] sm:$0xff]  ;;  %p873_p8 = por %p872_p7, %p871_p12 }
  0x3d   : > { %386 = vmatpush.msra.mxu0 %v293_v8  ;;  %424 = vmatpush.msra.mxu2 %v327_v15  ;;  %v342_v24 = vld [vmem:[#allocation5 + $0x1e0] sm:$0xff]  ;;  %v305_v26 = vld [vmem:[#allocation5 + $0xb8] sm:$0xff]  ;;  %v288_v29 = vld [vmem:[#allocation5 + $0x30] sm:$0xff]  ;;  %p869_p5 = pneg %p868_p3 }
  0x3e   : > { %406 = vmatpush.msra.mxu1 %v309_v9  ;;  %444 = vmatpush.msra.mxu3 %v343_v20  ;;  %v341_v28 = vld [vmem:[#allocation5 + $0x1d8] sm:$0xff]  ;;  %v304_v30 = vld [vmem:[#allocation5 + $0xb0] sm:$0xff]  ;;  %v323_v31 = vld [vmem:[#allocation5 + $0x148] sm:$0xff] }
  0x3f   : > { %387 = vmatpush.msra.mxu0 %v292_v10  ;;  %425 = vmatpush.msra.mxu2 %v326_v19  ;;  %v340_v32 = vld [vmem:[#allocation5 + $0x1d0] sm:$0xff]  ;;  %v287_v33 = vld [vmem:[#allocation5 + $0x28] sm:$0xff]  ;;  %v322_v35 = vld [vmem:[#allocation5 + $0x140] sm:$0xff]  ;;  %p874_p9 = pnand %p873_p8, %p869_p5 }
  0x40   : > { %407 = vmatpush.msra.mxu1 %v308_v12  ;;  %445 = vmatpush.msra.mxu3 %v342_v24  ;;  %v303_v34 = vld [vmem:[#allocation5 + $0xa8] sm:$0xff]  ;;  %v286_v37 = vld [vmem:[#allocation5 + $0x20] sm:$0xff]  ;;  %v321_v39 = vld [vmem:[#allocation5 + $0x138] sm:$0xff] }
  0x41   : > { %388 = vmatpush.msra.mxu0 %v291_v17  ;;  %426 = vmatpush.msra.mxu2 %v325_v23  ;;  %v339_v36 = vld [vmem:[#allocation5 + $0x1c8] sm:$0xff]  ;;  %v302_v38 = vld [vmem:[#allocation5 + $0xa0] sm:$0xff]  ;;  %v285_v41 = vld [vmem:[#allocation5 + $0x18] sm:$0xff] }
  0x42   : > { %408 = vmatpush.msra.mxu1 %v307_v18  ;;  %446 = vmatpush.msra.mxu3 %v341_v28  ;;  %v338_v40 = vld [vmem:[#allocation5 + $0x1c0] sm:$0xff]  ;;  %v301_v42 = vld [vmem:[#allocation5 + $0x98] sm:$0xff]  ;;  %v320_v43 = vld [vmem:[#allocation5 + $0x130] sm:$0xff] }
  0x43   : > { %389 = vmatpush.msra.mxu0 %v290_v21  ;;  %427 = vmatpush.msra.mxu2 %v324_v27  ;;  %v337_v44 = vld [vmem:[#allocation5 + $0x1b8] sm:$0xff]  ;;  %v284_v45 = vld [vmem:[#allocation5 + $0x10] sm:$0xff]  ;;  %v319_v47 = vld [vmem:[#allocation5 + $0x128] sm:$0xff] }
  0x44   : > { %409 = vmatpush.msra.mxu1 %v306_v22  ;;  %447 = vmatpush.msra.mxu3 %v340_v32  ;;  %v300_v46 = vld [vmem:[#allocation5 + $0x90] sm:$0xff]  ;;  %v283_v49 = vld [vmem:[#allocation5 + $0x8] sm:$0xff]  ;;  %v318_v51 = vld [vmem:[#allocation5 + $0x120] sm:$0xff] }
  0x45   : > { %390 = vmatpush.msra.mxu0 %v289_v25  ;;  %428 = vmatpush.msra.mxu2 %v323_v31  ;;  %v336_v48 = vld [vmem:[#allocation5 + $0x1b0] sm:$0xff]  ;;  %v299_v50 = vld [vmem:[#allocation5 + $0x88] sm:$0xff]  ;;  %v282_v53 = vld [vmem:[#allocation5] sm:$0xff] }
  0x46   : > { %410 = vmatpush.msra.mxu1 %v305_v26  ;;  %448 = vmatpush.msra.mxu3 %v339_v36  ;;  %v335_v52 = vld [vmem:[#allocation5 + $0x1a8] sm:$0xff]  ;;  %v298_v54 = vld [vmem:[#allocation5 + $0x80] sm:$0xff]  ;;  %v361_v55 = vld [vmem:[#allocation5 + $0x278] sm:$0xff] }
  0x47   : > { %391 = vmatpush.msra.mxu0 %v288_v29  ;;  %429 = vmatpush.msra.mxu2 %v322_v35  ;;  %v377_v56 = vld [vmem:[#allocation5 + $0x2f8] sm:$0xff]  ;;  %v334_v58 = vld [vmem:[#allocation5 + $0x1a0] sm:$0xff]  ;;  %v360_v59 = vld [vmem:[#allocation5 + $0x270] sm:$0xff] }
  0x48   : > { %411 = vmatpush.msra.mxu1 %v304_v30  ;;  %449 = vmatpush.msra.mxu3 %v338_v40  ;;  %v317_v57 = vld [vmem:[#allocation5 + $0x118] sm:$0xff]  ;;  %v376_v60 = vld [vmem:[#allocation5 + $0x2f0] sm:$0xff]  ;;  %v359_v63 = vld [vmem:[#allocation5 + $0x268] sm:$0xff] }
  0x49   : > { %392 = vmatpush.msra.mxu0 %v287_v33  ;;  %430 = vmatpush.msra.mxu2 %v321_v39  ;;  %v316_v61 = vld [vmem:[#allocation5 + $0x110] sm:$0xff]  ;;  %v333_v62 = vld [vmem:[#allocation5 + $0x198] sm:$0xff]  ;;  %v375_v0 = vld [vmem:[#allocation5 + $0x2e8] sm:$0xff] }
  0x4a   : > { %412 = vmatpush.msra.mxu1 %v303_v34  ;;  %450 = vmatpush.msra.mxu3 %v337_v44  ;;  %v315_v1 = vld [vmem:[#allocation5 + $0x108] sm:$0xff]  ;;  %v332_v2 = vld [vmem:[#allocation5 + $0x190] sm:$0xff]  ;;  %v358_v3 = vld [vmem:[#allocation5 + $0x260] sm:$0xff] }
  0x4b   : > { %393 = vmatpush.msra.mxu0 %v286_v37  ;;  %431 = vmatpush.msra.mxu2 %v320_v43  ;;  %v374_v4 = vld [vmem:[#allocation5 + $0x2e0] sm:$0xff]  ;;  %v331_v6 = vld [vmem:[#allocation5 + $0x188] sm:$0xff]  ;;  %v357_v7 = vld [vmem:[#allocation5 + $0x258] sm:$0xff] }
  0x4c   : > { %413 = vmatpush.msra.mxu1 %v302_v38  ;;  %451 = vmatpush.msra.mxu3 %v336_v48  ;;  %v314_v5 = vld [vmem:[#allocation5 + $0x100] sm:$0xff]  ;;  %v373_v8 = vld [vmem:[#allocation5 + $0x2d8] sm:$0xff]  ;;  %v356_v11 = vld [vmem:[#allocation5 + $0x250] sm:$0xff] }
  0x4d   : > { %394 = vmatpush.msra.mxu0 %v285_v41  ;;  %432 = vmatpush.msra.mxu2 %v319_v47  ;;  %v278_v9 = vld [vmem:[%s1054_s6 + $0x10] sm:$0xff]  ;;  %v276_v13 = vld [vmem:[%s1054_s6] sm:$0xff]  ;;  %v279_v14 = vld [vmem:[%s1054_s6 + $0x18] sm:$0xff] }
  0x4e   : > { %414 = vmatpush.msra.mxu1 %v301_v42  ;;  %452 = vmatpush.msra.mxu3 %v335_v52  ;;  %v330_v10 = vld [vmem:[#allocation5 + $0x180] sm:$0xff]  ;;  %v372_v12 = vld [vmem:[#allocation5 + $0x2d0] sm:$0xff]  ;;  %v355_v15 = vld [vmem:[#allocation5 + $0x248] sm:$0xff] }
  0x4f   : > { %395 = vmatpush.msra.mxu0 %v284_v45  ;;  %433 = vmatpush.msra.mxu2 %v318_v51  ;;  %v371_v16 = vld [vmem:[#allocation5 + $0x2c8] sm:$0xff]  ;;  %v518_v18 = vld [vmem:[#allocation7 + $0x78] sm:$0xff]  ;;  %v354_v19 = vld [vmem:[#allocation5 + $0x240] sm:$0xff] }
  0x50   : > { %415 = vmatpush.msra.mxu1 %v300_v46  ;;  %453 = vmatpush.msra.mxu3 %v334_v58  ;;  %v277_v17 = vld [vmem:[%s1054_s6 + $0x8] sm:$0xff]  ;;  %v370_v20 = vld [vmem:[#allocation5 + $0x2c0] sm:$0xff]  ;;  %v517_v21 = vld [vmem:[#allocation7 + $0x70] sm:$0xff] }
  0x51   : > { %396 = vmatpush.msra.mxu0 %v283_v49  ;;  %434 = vmatpush.msra.mxu2 %v317_v57  ;;  %v353_v22 = vld [vmem:[#allocation5 + $0x238] sm:$0xff]  ;;  %v516_v24 = vld [vmem:[#allocation7 + $0x68] sm:$0xff]  ;;  %v352_v25 = vld [vmem:[#allocation5 + $0x230] sm:$0xff] }
  0x52   : > { %416 = vmatpush.msra.mxu1 %v299_v50  ;;  %454 = vmatpush.msra.mxu3 %v333_v62  ;;  %v369_v23 = vld [vmem:[#allocation5 + $0x2b8] sm:$0xff]  ;;  %v368_v26 = vld [vmem:[#allocation5 + $0x2b0] sm:$0xff]  ;;  %v515_v27 = vld [vmem:[#allocation7 + $0x60] sm:$0xff] }
  0x53   : > { %397 = vmatpush.msra.mxu0 %v282_v53  ;;  %435 = vmatpush.msra.mxu2 %v316_v61  ;;  %v351_v28 = vld [vmem:[#allocation5 + $0x228] sm:$0xff]  ;;  %v514_v30 = vld [vmem:[#allocation7 + $0x58] sm:$0xff]  ;;  %v350_v31 = vld [vmem:[#allocation5 + $0x220] sm:$0xff] }
  0x54   : > { %417 = vmatpush.msra.mxu1 %v298_v54  ;;  %455 = vmatpush.msra.mxu3 %v332_v2  ;;  %v367_v29 = vld [vmem:[#allocation5 + $0x2a8] sm:$0xff]  ;;  %v366_v32 = vld [vmem:[#allocation5 + $0x2a0] sm:$0xff]  ;;  %v513_v33 = vld [vmem:[#allocation7 + $0x50] sm:$0xff] }
  0x55   : > { %462 = vmatpush.msrb.mxu0 %v361_v55  ;;  %436 = vmatpush.msra.mxu2 %v315_v1  ;;  %v349_v34 = vld [vmem:[#allocation5 + $0x218] sm:$0xff]  ;;  %v512_v36 = vld [vmem:[#allocation7 + $0x48] sm:$0xff]  ;;  %v348_v37 = vld [vmem:[#allocation5 + $0x210] sm:$0xff] }
  0x56   : > { %482 = vmatpush.msrb.mxu1 %v377_v56  ;;  %456 = vmatpush.msra.mxu3 %v331_v6  ;;  %v365_v35 = vld [vmem:[#allocation5 + $0x298] sm:$0xff]  ;;  %v364_v38 = vld [vmem:[#allocation5 + $0x290] sm:$0xff]  ;;  %v511_v39 = vld [vmem:[#allocation7 + $0x40] sm:$0xff] }
  0x57   : > { %463 = vmatpush.msrb.mxu0 %v360_v59  ;;  %437 = vmatpush.msra.mxu2 %v314_v5  ;;  %v347_v40 = vld [vmem:[#allocation5 + $0x208] sm:$0xff]  ;;  %v346_v42 = vld [vmem:[#allocation5 + $0x200] sm:$0xff]  ;;  %v510_v46 = vld [vmem:[#allocation7 + $0x38] sm:$0xff] }
  0x58   : > { %483 = vmatpush.msrb.mxu1 %v376_v60  ;;  %438 = vmatmul.f32.vlgmr.msra.gmra.mxu2 %v278_v9  ;;  %v363_v41 = vld [vmem:[#allocation5 + $0x288] sm:$0xff]  ;;  %v362_v43 = vld [vmem:[#allocation5 + $0x280] sm:$0xff]  ;;  %v509_v47 = vld [vmem:[#allocation7 + $0x30] sm:$0xff] }
  0x59   : > { %464 = vmatpush.msrb.mxu0 %v359_v63  ;;  %457 = vmatpush.msra.mxu3 %v330_v10  ;;  %v280_v44 = vld [vmem:[%s1054_s6 + $0x20] sm:$0xff]  ;;  %v281_v45 = vld [vmem:[%s1054_s6 + $0x28] sm:$0xff] }
  0x5a   : > { %484 = vmatpush.msrb.mxu1 %v375_v0  ;;  %398 = vmatmul.f32.vlgmr.msra.gmra.mxu0 %v276_v13  ;;  %v508_v48 = vld [vmem:[#allocation7 + $0x28] sm:$0xff]  ;;  %v507_v49 = vld [vmem:[#allocation7 + $0x20] sm:$0xff]  ;;  %v506_v50 = vld [vmem:[#allocation7 + $0x18] sm:$0xff] }
  0x5b   : > { %465 = vmatpush.msrb.mxu0 %v358_v3  ;;  %458 = vmatmul.f32.vlgmr.msra.gmra.mxu3 %v279_v14  ;;  %v505_v51 = vld [vmem:[#allocation7 + $0x10] sm:$0xff]  ;;  %v504_v52 = vld [vmem:[#allocation7 + $0x8] sm:$0xff]  ;;  %v503_v53 = vld [vmem:[#allocation7] sm:$0xff] }
  0x5c   : > { %485 = vmatpush.msrb.mxu1 %v374_v4  ;;  %523 = vmatpush.msrb.mxu2 %v518_v18  ;;  %v754_v54 = vld [vmem:[%s1118_s2] ss:$0 sm:$0xff]  ;;  %v543_v4 = vlaneseq }
  0x5d   : > { %466 = vmatpush.msrb.mxu0 %v357_v7  ;;  %418 = vmatmul.f32.vlgmr.msra.gmra.mxu1 %v277_v17  ;;  %v755_v6 = vld [vmem:[%s1120_s4] ss:$0 sm:$0xff] }
  0x5e   : > { %486 = vmatpush.msrb.mxu1 %v373_v8  ;;  %524 = vmatpush.msrb.mxu2 %v517_v21  ;;  %v544_v5 = vand.u32 127, %v543_v4 }
  0x5f   : > { %467 = vmatpush.msrb.mxu0 %v356_v11 }
  0x60   : > { %487 = vmatpush.msrb.mxu1 %v372_v12  ;;  %525 = vmatpush.msrb.mxu2 %v516_v24  ;;  %vm546_vm0 = vcmp.ge.s32.totalorder %v544_v5, 4  ;;  %vm547_vm1 = vcmp.lt.s32.totalorder %v544_v5, 10  ;;  %vm545_vm3 = vcmp.lt.s32.totalorder %v544_v5, 4 }
  0x61   : > { %468 = vmatpush.msrb.mxu0 %v355_v15  ;;  %vm1076_vm2 = vmand %vm546_vm0, %vm547_vm1 }
  0x62   : > { %488 = vmatpush.msrb.mxu1 %v371_v16  ;;  %526 = vmatpush.msrb.mxu2 %v515_v27 }
  0x63   : > { %469 = vmatpush.msrb.mxu0 %v354_v19 }
  0x64   : > { %489 = vmatpush.msrb.mxu1 %v370_v20  ;;  %527 = vmatpush.msrb.mxu2 %v514_v30 }
  0x65   : > { %470 = vmatpush.msrb.mxu0 %v353_v22 }
  0x66   : > { %490 = vmatpush.msrb.mxu1 %v369_v23  ;;  %528 = vmatpush.msrb.mxu2 %v513_v33 }
  0x67   : > { %471 = vmatpush.msrb.mxu0 %v352_v25 }
  0x68   : > { %491 = vmatpush.msrb.mxu1 %v368_v26  ;;  %529 = vmatpush.msrb.mxu2 %v512_v36 }
  0x69   : > { %472 = vmatpush.msrb.mxu0 %v351_v28 }
  0x6a   : > { %492 = vmatpush.msrb.mxu1 %v367_v29  ;;  %530 = vmatpush.msrb.mxu2 %v511_v39 }
  0x6b   : > { %473 = vmatpush.msrb.mxu0 %v350_v31 }
  0x6c   : > { %493 = vmatpush.msrb.mxu1 %v366_v32  ;;  %531 = vmatpush.msrb.mxu2 %v510_v46 }
  0x6d   : > { %474 = vmatpush.msrb.mxu0 %v349_v34 }
  0x6e   : > { %494 = vmatpush.msrb.mxu1 %v365_v35  ;;  %532 = vmatpush.msrb.mxu2 %v509_v47 }
  0x6f   : > { %475 = vmatpush.msrb.mxu0 %v348_v37 }
  0x70   : > { %495 = vmatpush.msrb.mxu1 %v364_v38  ;;  %533 = vmatpush.msrb.mxu2 %v508_v48 }
  0x71   : > { %476 = vmatpush.msrb.mxu0 %v347_v40 }
  0x72   : > { %496 = vmatpush.msrb.mxu1 %v363_v41  ;;  %534 = vmatpush.msrb.mxu2 %v507_v49 }
  0x73   : > { %477 = vmatpush.msrb.mxu0 %v346_v42 }
  0x74   : > { %497 = vmatpush.msrb.mxu1 %v362_v43  ;;  %478 = vmatmul.f32.vlgmr.msrb.gmra.mxu0 %v280_v44 }
  0x75   : > { %498 = vmatmul.f32.vlgmr.msrb.gmra.mxu1 %v281_v45  ;;  %535 = vmatpush.msrb.mxu2 %v506_v50 }
  0x77   : > { %536 = vmatpush.msrb.mxu2 %v505_v51 }
  0x79   : > { %537 = vmatpush.msrb.mxu2 %v504_v52 }
  0x7b   : > { %538 = vmatpush.msrb.mxu2 %v503_v53 }
  0xd7   : > { %v399_v55 = vpop.f32.mrf.mxu0 }
  0xd8   : > { %v400_v56 = vadd.f32 %v754_v54, %v399_v55 }
  0xda   : > { %v419_v57 = vpop.f32.mrf.mxu1 }
  0xdb   : > { %v420_v58 = vadd.f32 %v419_v57, %v400_v56  ;;  %v439_v59 = vpop.f32.mrf.mxu2 }
  0xdd   : > { %v440_v60 = vadd.f32 %v439_v59, %v420_v58 }
  0xde   : > { %v459_v61 = vpop.f32.mrf.mxu3 }
  0xdf   : > { %v460_v62 = vadd.f32 %v459_v61, %v440_v60 }
  0xf1   : > { %v479_v63 = vpop.f32.mrf.mxu0 }
  0xf2   : > { %v499_v0 = vpop.f32.mrf.mxu1  ;;  %v480_v1 = vadd.f32 %v479_v63, %v460_v62 }
  0xf4   : > { %v500_v2 = vadd.f32 %v499_v0, %v480_v1 }
  0xf6   : > { %v502_v3 = vmax.f32 %v500_v2, 0.0 }
  0xf8   : > { %539 = vmatmul.f32.vlgmr.msrb.gmra.mxu2 %v502_v3 }
 0x17b   : > { %v540_v7 = vpop.f32.mrf.mxu2 }
 0x17c   : > { %v541_v9 = vadd.f32 %v755_v6, %v540_v7 }
 0x17e   : > { %v560_v10 = vsel %vm1076_vm2, %v541_v9, 0.0  ;;  %v549_v11 = vsel %vm545_vm3, %v541_v9, -inf }
 0x17f   : > { %550 = vmax.xlane.f32.xlu0 %v549_v11 }
 0x1f2   : > { %v551_v12 = vpop.xlane.xlu0 %550 }
 0x1f3   : > { %v552_v13 = vsub.f32 %v549_v11, %v551_v12 }
 0x1f5   : > { %v553_v14 = vmul.f32 1.442695, %v552_v13 }
 0x1f7   : > { %756 = vpow2.f32 %v553_v14 }
 0x1fd   : > { %v757_v15 = vpop.eup %756 }
 0x1fe   : > { %v555_v16 = vsel %vm545_vm3, %v757_v15, 0.0 }
 0x1ff   : > { %556 = vadd.xlane.f32.xlu0 %v555_v16 }
 0x272   : > { %v557_v17 = vpop.xlane.xlu0 %556 }
 0x273   : > { %758 = vrcp.f32 %v557_v17 }
 0x279   : > { %v759_v18 = vpop.eup %758 }
 0x27a   : > { %v559_v19 = vmul.f32 %v759_v18, %v555_v16 }
 0x27c   : > { %v561_v20 = vadd.f32 %v560_v10, %v559_v19 }
 0x27e   : > { %562 = vst [vmem:[%s275_s14] sm:$0xff] %v561_v20 }
 0x27f   : > { %877 = shalt.err (!%p874_p9)
}
 0x280   : > { %695 = dma.vmem_to_hbm [thread:$0]  (%p1021_p4), %s577_s29, 128, %s579_s30, %s564_s27  }
 0x281 PF: > { %s590_s17 = sand.u32 1, %s908_s18   ;;  %p1131_p10 = scmp.ge.s32.totalorder %s920_s21, 2 }
 0x282   : > { %s591_s7 = scalar_lea.sflag [#allocation4], %s590_s17 }
 0x283   : > { %p709_p11 = pnand %p1131_p10, %p1025_p6 }
 0x285   : > { %p710_p13 = pneg %p709_p11 }
 0x287   : > { %903 = dma.done.wait (%p710_p13), %s591_s7, 128  }
 0x288   : > { %905 = vsyncadd (%p710_p13), %s591_s7, 4294967168  ;;  %p19_p0 = scmp.ge.s32.totalorder %s999_s12, 4   ;;  %s1132_s18 = smov %s912_s19 }
 0x289   : > { %s1133_s19 = smov %s916_s20  ;;  %s1134_s20 = smov %s1010_s15 }
 0x28a   : > { %s1135_s21 = smov %s999_s12  ;;  %21 = sbr.rel (!%p19_p0) target bundleno = 8 (0x8), region = 93 }
 0x28f   :  { %597 = vsyncpa [#allocation3], 1 }
 0x290   :  { %599 = vsyncpa [#allocation3 + $0x1], 1 }
 0x291   :  { %600 = vsyncpa [#allocation6], 1 }
 0x292   :  { %601 = vsyncpa [#allocation4], 1 }
 0x293   :  { %603 = vsyncpa [#allocation4 + $0x1], 1 }

</bundles_post_ra>
